<compile_context>
chip_gen: v6e
topology: v6e:2x2x1
jax: 0.10.0
libtpu: 0.0.40
codegen_flags: <defaults>
</compile_context>

<pallas_src>
import functools
import math

import jax
import jax.numpy as jnp
from jax.experimental import pallas as pl
from jax.experimental.pallas import tpu as pltpu


def gru_recurrence_kernel(x_ref, w_ih_ref, b_ih_ref, w_hh_ref, b_hh_ref,
                          h_out_ref, *, seq_len, batch, hidden):
    """x_ref: (T*B, D) with rows [t*B:(t+1)*B] = timestep t (time-major).

    Gate order along the 3H axis is [r | z | n], matching torch.nn.GRU.
    Writes the last hidden state (B, H) to h_out_ref.
    """
    H = hidden

    # ---- Phase 0: dense input projection for ALL timesteps at once. -------
    # (T*B, D) @ (D, 3H) + b_ih  -> (T*B, 3H).  Off the serial critical path.
    gates_x = (jnp.dot(x_ref[...], w_ih_ref[...],
                       preferred_element_type=jnp.float32)
               + b_ih_ref[...])

    # Hoist loop-invariant weight / bias loads out of the recurrence.
    w_hh = w_hh_ref[...]                      # (H, 3H)
    b_hh = b_hh_ref[...]                      # (1, 3H)

    # ---- Serial recurrence: one fused h @ W_hh per step. ------------------
    # h0 = zeros (matches torch.zeros in the PyTorch forward).
    h = jnp.zeros((batch, H), jnp.float32)
    # T is small and static -> fully unrolled loop (equivalent to
    # lax.fori_loop(..., unroll=True)); every slice below is static.
    for t in range(seq_len):
        gx = gates_x[t * batch:(t + 1) * batch, :]                 # (B, 3H)
        gh = jnp.dot(h, w_hh, preferred_element_type=jnp.float32) + b_hh
        r = jax.nn.sigmoid(gx[:, 0 * H:1 * H] + gh[:, 0 * H:1 * H])
        z = jax.nn.sigmoid(gx[:, 1 * H:2 * H] + gh[:, 1 * H:2 * H])
        n = jnp.tanh(gx[:, 2 * H:3 * H] + r * gh[:, 2 * H:3 * H])
        h = (1.0 - z) * n + z * h

    h_out_ref[...] = h.astype(h_out_ref.dtype)


def gru_forward(x, params):
    """x: (B, T, D) float32 (batch_first). Returns (B, output_dim)."""
    w_ih, w_hh, b_ih, b_hh, w_fc, b_fc = params
    B, T, D = x.shape
    H = w_hh.shape[0]

    # batch_first -> time-major, flattened so phase 0 is one dense matmul.
    x_flat = jnp.transpose(x, (1, 0, 2)).reshape(T * B, D)

    kernel = functools.partial(gru_recurrence_kernel,
                               seq_len=T, batch=B, hidden=H)

    # No grid: single invocation, full arrays resident in VMEM (single
    # buffered -- nothing is pipelined, so no redundant weight copies).
    h_last = pl.pallas_call(
        kernel,
        out_shape=jax.ShapeDtypeStruct((B, H), jnp.float32),
        in_specs=[pl.BlockSpec(memory_space=pltpu.MemorySpace.VMEM)] * 5,
        out_specs=pl.BlockSpec(memory_space=pltpu.MemorySpace.VMEM),
    )(x_flat, w_ih, b_ih, w_hh, b_hh)

    # Final Linear on the last timestep's hidden state: O=1, trivial -> XLA
    # (avoids a 1-lane masked store inside the kernel).
    return h_last @ w_fc + b_fc


def init_params(key, input_dim, hidden_dim, output_dim):
    """Deterministic init matching PyTorch shapes.

    Gate weights are pre-transposed and concatenated along the last axis in
    PyTorch gate order [r | z | n]:
      w_ih: (D, 3H), w_hh: (H, 3H), b_ih/b_hh: (1, 3H).
    """
    ks = jax.random.split(key, 6)
    k = 1.0 / math.sqrt(hidden_dim)
    w_ih = jax.random.uniform(ks[0], (input_dim, 3 * hidden_dim), jnp.float32, -k, k)
    w_hh = jax.random.uniform(ks[1], (hidden_dim, 3 * hidden_dim), jnp.float32, -k, k)
    b_ih = jax.random.uniform(ks[2], (1, 3 * hidden_dim), jnp.float32, -k, k)
    b_hh = jax.random.uniform(ks[3], (1, 3 * hidden_dim), jnp.float32, -k, k)
    w_fc = jax.random.uniform(ks[4], (hidden_dim, output_dim), jnp.float32, -k, k)
    b_fc = jax.random.uniform(ks[5], (1, output_dim), jnp.float32, -k, k)
    return (w_ih, w_hh, b_ih, b_hh, w_fc, b_fc)


def gru_reference(x, params):
    """Pure-JAX reference of the PyTorch forward pass (same param layout)."""
    w_ih, w_hh, b_ih, b_hh, w_fc, b_fc = params
    B = x.shape[0]
    H = w_hh.shape[0]

    def step(h, x_t):
        gx = x_t @ w_ih + b_ih
        gh = h @ w_hh + b_hh
        r = jax.nn.sigmoid(gx[:, 0 * H:1 * H] + gh[:, 0 * H:1 * H])
        z = jax.nn.sigmoid(gx[:, 1 * H:2 * H] + gh[:, 1 * H:2 * H])
        n = jnp.tanh(gx[:, 2 * H:3 * H] + r * gh[:, 2 * H:3 * H])
        h_new = (1.0 - z) * n + z * h
        return h_new, None

    h0 = jnp.zeros((B, H), jnp.float32)
    h_last, _ = jax.lax.scan(step, h0, jnp.transpose(x, (1, 0, 2)))
    return h_last @ w_fc + b_fc


if __name__ == "__main__":
    B, T, D = 2, 8, 4          # batch, seq_len, input_dim (multivariate + price)
    hidden_dim = 48
    output_dim = 1

    key = jax.random.PRNGKey(0)
    kx, kp = jax.random.split(key)
    x = jax.random.normal(kx, (B, T, D), jnp.float32)
    params = init_params(kp, D, hidden_dim, output_dim)

    out = gru_forward(x, params)
    out = jax.block_until_ready(out)

    ref = gru_reference(x, params)
    assert out.shape == (B, output_dim)
    assert jnp.allclose(out, ref, atol=1e-5, rtol=1e-5), (out, ref)

    print("KERNEL_OK")
</pallas_src>

<mosaic_0001>
module attributes {stable_mosaic.version = 11 : i64} {
  func.func @gru_recurrence_kernel(%arg0: memref<16x4xf32, #tpu.memory_space<vmem>>, %arg1: memref<4x144xf32, #tpu.memory_space<vmem>>, %arg2: memref<1x144xf32, #tpu.memory_space<vmem>>, %arg3: memref<48x144xf32, #tpu.memory_space<vmem>>, %arg4: memref<1x144xf32, #tpu.memory_space<vmem>>, %arg5: memref<2x48xf32, #tpu.memory_space<vmem>>) attributes {dimension_semantics = [], scalar_prefetch = 0 : i64, scratch_operands = 0 : i64, tpu.core_type = #tpu.core_type<tc>} {
    %c0 = arith.constant 0 : index
    %c0_0 = arith.constant 0 : index
    %0 = vector.load %arg0[%c0, %c0_0] : memref<16x4xf32, #tpu.memory_space<vmem>>, vector<16x4xf32>
    %c0_1 = arith.constant 0 : index
    %c0_2 = arith.constant 0 : index
    %1 = vector.load %arg1[%c0_1, %c0_2] : memref<4x144xf32, #tpu.memory_space<vmem>>, vector<4x144xf32>
    %cst = arith.constant dense<0.000000e+00> : vector<16x144xf32>
    %2 = tpu.matmul %0, %1, %cst {dimension_numbers = #tpu.dot_dimension_numbers<[1], [0], [0], [1], [0, 0, 1, 1], [], []>} : vector<16x4xf32>, vector<4x144xf32>, vector<16x144xf32> -> vector<16x144xf32>
    %c0_3 = arith.constant 0 : index
    %c0_4 = arith.constant 0 : index
    %3 = vector.load %arg2[%c0_3, %c0_4] : memref<1x144xf32, #tpu.memory_space<vmem>>, vector<1x144xf32>
    %4 = vector.broadcast %3 : vector<1x144xf32> to vector<16x144xf32>
    %5 = arith.addf %2, %4 : vector<16x144xf32>
    %c0_5 = arith.constant 0 : index
    %c0_6 = arith.constant 0 : index
    %6 = vector.load %arg3[%c0_5, %c0_6] : memref<48x144xf32, #tpu.memory_space<vmem>>, vector<48x144xf32>
    %c0_7 = arith.constant 0 : index
    %c0_8 = arith.constant 0 : index
    %7 = vector.load %arg4[%c0_7, %c0_8] : memref<1x144xf32, #tpu.memory_space<vmem>>, vector<1x144xf32>
    %cst_9 = arith.constant 0.000000e+00 : f32
    %8 = vector.broadcast %cst_9 : f32 to vector<2x48xf32>
    %9 = vector.extract_strided_slice %5 {offsets = [0, 0], sizes = [2, 144], strides = [1, 1]} : vector<16x144xf32> to vector<2x144xf32>
    %cst_10 = arith.constant dense<0.000000e+00> : vector<2x144xf32>
    %10 = tpu.matmul %8, %6, %cst_10 {dimension_numbers = #tpu.dot_dimension_numbers<[1], [0], [0], [1], [0, 0, 1, 1], [], []>} : vector<2x48xf32>, vector<48x144xf32>, vector<2x144xf32> -> vector<2x144xf32>
    %11 = vector.broadcast %7 : vector<1x144xf32> to vector<2x144xf32>
    %12 = arith.addf %10, %11 : vector<2x144xf32>
    %13 = vector.extract_strided_slice %9 {offsets = [0, 0], sizes = [2, 48], strides = [1, 1]} : vector<2x144xf32> to vector<2x48xf32>
    %14 = vector.extract_strided_slice %12 {offsets = [0, 0], sizes = [2, 48], strides = [1, 1]} : vector<2x144xf32> to vector<2x48xf32>
    %15 = arith.addf %13, %14 : vector<2x48xf32>
    %16 = arith.negf %15 : vector<2x48xf32>
    %17 = math.exp %16 : vector<2x48xf32>
    %cst_11 = arith.constant 1.000000e+00 : f32
    %18 = vector.broadcast %cst_11 : f32 to vector<2x48xf32>
    %19 = arith.addf %18, %17 : vector<2x48xf32>
    %20 = arith.divf %18, %19 : vector<2x48xf32>
    %21 = vector.extract_strided_slice %9 {offsets = [0, 48], sizes = [2, 48], strides = [1, 1]} : vector<2x144xf32> to vector<2x48xf32>
    %22 = vector.extract_strided_slice %12 {offsets = [0, 48], sizes = [2, 48], strides = [1, 1]} : vector<2x144xf32> to vector<2x48xf32>
    %23 = arith.addf %21, %22 : vector<2x48xf32>
    %24 = arith.negf %23 : vector<2x48xf32>
    %25 = math.exp %24 : vector<2x48xf32>
    %cst_12 = arith.constant 1.000000e+00 : f32
    %26 = vector.broadcast %cst_12 : f32 to vector<2x48xf32>
    %27 = arith.addf %26, %25 : vector<2x48xf32>
    %28 = arith.divf %26, %27 : vector<2x48xf32>
    %29 = vector.extract_strided_slice %9 {offsets = [0, 96], sizes = [2, 48], strides = [1, 1]} : vector<2x144xf32> to vector<2x48xf32>
    %30 = vector.extract_strided_slice %12 {offsets = [0, 96], sizes = [2, 48], strides = [1, 1]} : vector<2x144xf32> to vector<2x48xf32>
    %31 = arith.mulf %20, %30 : vector<2x48xf32>
    %32 = arith.addf %29, %31 : vector<2x48xf32>
    %33 = math.tanh %32 : vector<2x48xf32>
    %cst_13 = arith.constant 1.000000e+00 : f32
    %34 = vector.broadcast %cst_13 : f32 to vector<2x48xf32>
    %35 = arith.subf %34, %28 : vector<2x48xf32>
    %36 = arith.mulf %35, %33 : vector<2x48xf32>
    %37 = arith.mulf %28, %8 : vector<2x48xf32>
    %38 = arith.addf %36, %37 : vector<2x48xf32>
    %39 = vector.extract_strided_slice %5 {offsets = [2, 0], sizes = [2, 144], strides = [1, 1]} : vector<16x144xf32> to vector<2x144xf32>
    %cst_14 = arith.constant dense<0.000000e+00> : vector<2x144xf32>
    %40 = tpu.matmul %38, %6, %cst_14 {dimension_numbers = #tpu.dot_dimension_numbers<[1], [0], [0], [1], [0, 0, 1, 1], [], []>} : vector<2x48xf32>, vector<48x144xf32>, vector<2x144xf32> -> vector<2x144xf32>
    %41 = vector.broadcast %7 : vector<1x144xf32> to vector<2x144xf32>
    %42 = arith.addf %40, %41 : vector<2x144xf32>
    %43 = vector.extract_strided_slice %39 {offsets = [0, 0], sizes = [2, 48], strides = [1, 1]} : vector<2x144xf32> to vector<2x48xf32>
    %44 = vector.extract_strided_slice %42 {offsets = [0, 0], sizes = [2, 48], strides = [1, 1]} : vector<2x144xf32> to vector<2x48xf32>
    %45 = arith.addf %43, %44 : vector<2x48xf32>
    %46 = arith.negf %45 : vector<2x48xf32>
    %47 = math.exp %46 : vector<2x48xf32>
    %cst_15 = arith.constant 1.000000e+00 : f32
    %48 = vector.broadcast %cst_15 : f32 to vector<2x48xf32>
    %49 = arith.addf %48, %47 : vector<2x48xf32>
    %50 = arith.divf %48, %49 : vector<2x48xf32>
    %51 = vector.extract_strided_slice %39 {offsets = [0, 48], sizes = [2, 48], strides = [1, 1]} : vector<2x144xf32> to vector<2x48xf32>
    %52 = vector.extract_strided_slice %42 {offsets = [0, 48], sizes = [2, 48], strides = [1, 1]} : vector<2x144xf32> to vector<2x48xf32>
    %53 = arith.addf %51, %52 : vector<2x48xf32>
    %54 = arith.negf %53 : vector<2x48xf32>
    %55 = math.exp %54 : vector<2x48xf32>
    %cst_16 = arith.constant 1.000000e+00 : f32
    %56 = vector.broadcast %cst_16 : f32 to vector<2x48xf32>
    %57 = arith.addf %56, %55 : vector<2x48xf32>
    %58 = arith.divf %56, %57 : vector<2x48xf32>
    %59 = vector.extract_strided_slice %39 {offsets = [0, 96], sizes = [2, 48], strides = [1, 1]} : vector<2x144xf32> to vector<2x48xf32>
    %60 = vector.extract_strided_slice %42 {offsets = [0, 96], sizes = [2, 48], strides = [1, 1]} : vector<2x144xf32> to vector<2x48xf32>
    %61 = arith.mulf %50, %60 : vector<2x48xf32>
    %62 = arith.addf %59, %61 : vector<2x48xf32>
    %63 = math.tanh %62 : vector<2x48xf32>
    %cst_17 = arith.constant 1.000000e+00 : f32
    %64 = vector.broadcast %cst_17 : f32 to vector<2x48xf32>
    %65 = arith.subf %64, %58 : vector<2x48xf32>
    %66 = arith.mulf %65, %63 : vector<2x48xf32>
    %67 = arith.mulf %58, %38 : vector<2x48xf32>
    %68 = arith.addf %66, %67 : vector<2x48xf32>
    %69 = vector.extract_strided_slice %5 {offsets = [4, 0], sizes = [2, 144], strides = [1, 1]} : vector<16x144xf32> to vector<2x144xf32>
    %cst_18 = arith.constant dense<0.000000e+00> : vector<2x144xf32>
    %70 = tpu.matmul %68, %6, %cst_18 {dimension_numbers = #tpu.dot_dimension_numbers<[1], [0], [0], [1], [0, 0, 1, 1], [], []>} : vector<2x48xf32>, vector<48x144xf32>, vector<2x144xf32> -> vector<2x144xf32>
    %71 = vector.broadcast %7 : vector<1x144xf32> to vector<2x144xf32>
    %72 = arith.addf %70, %71 : vector<2x144xf32>
    %73 = vector.extract_strided_slice %69 {offsets = [0, 0], sizes = [2, 48], strides = [1, 1]} : vector<2x144xf32> to vector<2x48xf32>
    %74 = vector.extract_strided_slice %72 {offsets = [0, 0], sizes = [2, 48], strides = [1, 1]} : vector<2x144xf32> to vector<2x48xf32>
    %75 = arith.addf %73, %74 : vector<2x48xf32>
    %76 = arith.negf %75 : vector<2x48xf32>
    %77 = math.exp %76 : vector<2x48xf32>
    %cst_19 = arith.constant 1.000000e+00 : f32
    %78 = vector.broadcast %cst_19 : f32 to vector<2x48xf32>
    %79 = arith.addf %78, %77 : vector<2x48xf32>
    %80 = arith.divf %78, %79 : vector<2x48xf32>
    %81 = vector.extract_strided_slice %69 {offsets = [0, 48], sizes = [2, 48], strides = [1, 1]} : vector<2x144xf32> to vector<2x48xf32>
    %82 = vector.extract_strided_slice %72 {offsets = [0, 48], sizes = [2, 48], strides = [1, 1]} : vector<2x144xf32> to vector<2x48xf32>
    %83 = arith.addf %81, %82 : vector<2x48xf32>
    %84 = arith.negf %83 : vector<2x48xf32>
    %85 = math.exp %84 : vector<2x48xf32>
    %cst_20 = arith.constant 1.000000e+00 : f32
    %86 = vector.broadcast %cst_20 : f32 to vector<2x48xf32>
    %87 = arith.addf %86, %85 : vector<2x48xf32>
    %88 = arith.divf %86, %87 : vector<2x48xf32>
    %89 = vector.extract_strided_slice %69 {offsets = [0, 96], sizes = [2, 48], strides = [1, 1]} : vector<2x144xf32> to vector<2x48xf32>
    %90 = vector.extract_strided_slice %72 {offsets = [0, 96], sizes = [2, 48], strides = [1, 1]} : vector<2x144xf32> to vector<2x48xf32>
    %91 = arith.mulf %80, %90 : vector<2x48xf32>
    %92 = arith.addf %89, %91 : vector<2x48xf32>
    %93 = math.tanh %92 : vector<2x48xf32>
    %cst_21 = arith.constant 1.000000e+00 : f32
    %94 = vector.broadcast %cst_21 : f32 to vector<2x48xf32>
    %95 = arith.subf %94, %88 : vector<2x48xf32>
    %96 = arith.mulf %95, %93 : vector<2x48xf32>
    %97 = arith.mulf %88, %68 : vector<2x48xf32>
    %98 = arith.addf %96, %97 : vector<2x48xf32>
    %99 = vector.extract_strided_slice %5 {offsets = [6, 0], sizes = [2, 144], strides = [1, 1]} : vector<16x144xf32> to vector<2x144xf32>
    %cst_22 = arith.constant dense<0.000000e+00> : vector<2x144xf32>
    %100 = tpu.matmul %98, %6, %cst_22 {dimension_numbers = #tpu.dot_dimension_numbers<[1], [0], [0], [1], [0, 0, 1, 1], [], []>} : vector<2x48xf32>, vector<48x144xf32>, vector<2x144xf32> -> vector<2x144xf32>
    %101 = vector.broadcast %7 : vector<1x144xf32> to vector<2x144xf32>
    %102 = arith.addf %100, %101 : vector<2x144xf32>
    %103 = vector.extract_strided_slice %99 {offsets = [0, 0], sizes = [2, 48], strides = [1, 1]} : vector<2x144xf32> to vector<2x48xf32>
    %104 = vector.extract_strided_slice %102 {offsets = [0, 0], sizes = [2, 48], strides = [1, 1]} : vector<2x144xf32> to vector<2x48xf32>
    %105 = arith.addf %103, %104 : vector<2x48xf32>
    %106 = arith.negf %105 : vector<2x48xf32>
    %107 = math.exp %106 : vector<2x48xf32>
    %cst_23 = arith.constant 1.000000e+00 : f32
    %108 = vector.broadcast %cst_23 : f32 to vector<2x48xf32>
    %109 = arith.addf %108, %107 : vector<2x48xf32>
    %110 = arith.divf %108, %109 : vector<2x48xf32>
    %111 = vector.extract_strided_slice %99 {offsets = [0, 48], sizes = [2, 48], strides = [1, 1]} : vector<2x144xf32> to vector<2x48xf32>
    %112 = vector.extract_strided_slice %102 {offsets = [0, 48], sizes = [2, 48], strides = [1, 1]} : vector<2x144xf32> to vector<2x48xf32>
    %113 = arith.addf %111, %112 : vector<2x48xf32>
    %114 = arith.negf %113 : vector<2x48xf32>
    %115 = math.exp %114 : vector<2x48xf32>
    %cst_24 = arith.constant 1.000000e+00 : f32
    %116 = vector.broadcast %cst_24 : f32 to vector<2x48xf32>
    %117 = arith.addf %116, %115 : vector<2x48xf32>
    %118 = arith.divf %116, %117 : vector<2x48xf32>
    %119 = vector.extract_strided_slice %99 {offsets = [0, 96], sizes = [2, 48], strides = [1, 1]} : vector<2x144xf32> to vector<2x48xf32>
    %120 = vector.extract_strided_slice %102 {offsets = [0, 96], sizes = [2, 48], strides = [1, 1]} : vector<2x144xf32> to vector<2x48xf32>
    %121 = arith.mulf %110, %120 : vector<2x48xf32>
    %122 = arith.addf %119, %121 : vector<2x48xf32>
    %123 = math.tanh %122 : vector<2x48xf32>
    %cst_25 = arith.constant 1.000000e+00 : f32
    %124 = vector.broadcast %cst_25 : f32 to vector<2x48xf32>
    %125 = arith.subf %124, %118 : vector<2x48xf32>
    %126 = arith.mulf %125, %123 : vector<2x48xf32>
    %127 = arith.mulf %118, %98 : vector<2x48xf32>
    %128 = arith.addf %126, %127 : vector<2x48xf32>
    %129 = vector.extract_strided_slice %5 {offsets = [8, 0], sizes = [2, 144], strides = [1, 1]} : vector<16x144xf32> to vector<2x144xf32>
    %cst_26 = arith.constant dense<0.000000e+00> : vector<2x144xf32>
    %130 = tpu.matmul %128, %6, %cst_26 {dimension_numbers = #tpu.dot_dimension_numbers<[1], [0], [0], [1], [0, 0, 1, 1], [], []>} : vector<2x48xf32>, vector<48x144xf32>, vector<2x144xf32> -> vector<2x144xf32>
    %131 = vector.broadcast %7 : vector<1x144xf32> to vector<2x144xf32>
    %132 = arith.addf %130, %131 : vector<2x144xf32>
    %133 = vector.extract_strided_slice %129 {offsets = [0, 0], sizes = [2, 48], strides = [1, 1]} : vector<2x144xf32> to vector<2x48xf32>
    %134 = vector.extract_strided_slice %132 {offsets = [0, 0], sizes = [2, 48], strides = [1, 1]} : vector<2x144xf32> to vector<2x48xf32>
    %135 = arith.addf %133, %134 : vector<2x48xf32>
    %136 = arith.negf %135 : vector<2x48xf32>
    %137 = math.exp %136 : vector<2x48xf32>
    %cst_27 = arith.constant 1.000000e+00 : f32
    %138 = vector.broadcast %cst_27 : f32 to vector<2x48xf32>
    %139 = arith.addf %138, %137 : vector<2x48xf32>
    %140 = arith.divf %138, %139 : vector<2x48xf32>
    %141 = vector.extract_strided_slice %129 {offsets = [0, 48], sizes = [2, 48], strides = [1, 1]} : vector<2x144xf32> to vector<2x48xf32>
    %142 = vector.extract_strided_slice %132 {offsets = [0, 48], sizes = [2, 48], strides = [1, 1]} : vector<2x144xf32> to vector<2x48xf32>
    %143 = arith.addf %141, %142 : vector<2x48xf32>
    %144 = arith.negf %143 : vector<2x48xf32>
    %145 = math.exp %144 : vector<2x48xf32>
    %cst_28 = arith.constant 1.000000e+00 : f32
    %146 = vector.broadcast %cst_28 : f32 to vector<2x48xf32>
    %147 = arith.addf %146, %145 : vector<2x48xf32>
    %148 = arith.divf %146, %147 : vector<2x48xf32>
    %149 = vector.extract_strided_slice %129 {offsets = [0, 96], sizes = [2, 48], strides = [1, 1]} : vector<2x144xf32> to vector<2x48xf32>
    %150 = vector.extract_strided_slice %132 {offsets = [0, 96], sizes = [2, 48], strides = [1, 1]} : vector<2x144xf32> to vector<2x48xf32>
    %151 = arith.mulf %140, %150 : vector<2x48xf32>
    %152 = arith.addf %149, %151 : vector<2x48xf32>
    %153 = math.tanh %152 : vector<2x48xf32>
    %cst_29 = arith.constant 1.000000e+00 : f32
    %154 = vector.broadcast %cst_29 : f32 to vector<2x48xf32>
    %155 = arith.subf %154, %148 : vector<2x48xf32>
    %156 = arith.mulf %155, %153 : vector<2x48xf32>
    %157 = arith.mulf %148, %128 : vector<2x48xf32>
    %158 = arith.addf %156, %157 : vector<2x48xf32>
    %159 = vector.extract_strided_slice %5 {offsets = [10, 0], sizes = [2, 144], strides = [1, 1]} : vector<16x144xf32> to vector<2x144xf32>
    %cst_30 = arith.constant dense<0.000000e+00> : vector<2x144xf32>
    %160 = tpu.matmul %158, %6, %cst_30 {dimension_numbers = #tpu.dot_dimension_numbers<[1], [0], [0], [1], [0, 0, 1, 1], [], []>} : vector<2x48xf32>, vector<48x144xf32>, vector<2x144xf32> -> vector<2x144xf32>
    %161 = vector.broadcast %7 : vector<1x144xf32> to vector<2x144xf32>
    %162 = arith.addf %160, %161 : vector<2x144xf32>
    %163 = vector.extract_strided_slice %159 {offsets = [0, 0], sizes = [2, 48], strides = [1, 1]} : vector<2x144xf32> to vector<2x48xf32>
    %164 = vector.extract_strided_slice %162 {offsets = [0, 0], sizes = [2, 48], strides = [1, 1]} : vector<2x144xf32> to vector<2x48xf32>
    %165 = arith.addf %163, %164 : vector<2x48xf32>
    %166 = arith.negf %165 : vector<2x48xf32>
    %167 = math.exp %166 : vector<2x48xf32>
    %cst_31 = arith.constant 1.000000e+00 : f32
    %168 = vector.broadcast %cst_31 : f32 to vector<2x48xf32>
    %169 = arith.addf %168, %167 : vector<2x48xf32>
    %170 = arith.divf %168, %169 : vector<2x48xf32>
    %171 = vector.extract_strided_slice %159 {offsets = [0, 48], sizes = [2, 48], strides = [1, 1]} : vector<2x144xf32> to vector<2x48xf32>
    %172 = vector.extract_strided_slice %162 {offsets = [0, 48], sizes = [2, 48], strides = [1, 1]} : vector<2x144xf32> to vector<2x48xf32>
    %173 = arith.addf %171, %172 : vector<2x48xf32>
    %174 = arith.negf %173 : vector<2x48xf32>
    %175 = math.exp %174 : vector<2x48xf32>
    %cst_32 = arith.constant 1.000000e+00 : f32
    %176 = vector.broadcast %cst_32 : f32 to vector<2x48xf32>
    %177 = arith.addf %176, %175 : vector<2x48xf32>
    %178 = arith.divf %176, %177 : vector<2x48xf32>
    %179 = vector.extract_strided_slice %159 {offsets = [0, 96], sizes = [2, 48], strides = [1, 1]} : vector<2x144xf32> to vector<2x48xf32>
    %180 = vector.extract_strided_slice %162 {offsets = [0, 96], sizes = [2, 48], strides = [1, 1]} : vector<2x144xf32> to vector<2x48xf32>
    %181 = arith.mulf %170, %180 : vector<2x48xf32>
    %182 = arith.addf %179, %181 : vector<2x48xf32>
    %183 = math.tanh %182 : vector<2x48xf32>
    %cst_33 = arith.constant 1.000000e+00 : f32
    %184 = vector.broadcast %cst_33 : f32 to vector<2x48xf32>
    %185 = arith.subf %184, %178 : vector<2x48xf32>
    %186 = arith.mulf %185, %183 : vector<2x48xf32>
    %187 = arith.mulf %178, %158 : vector<2x48xf32>
    %188 = arith.addf %186, %187 : vector<2x48xf32>
    %189 = vector.extract_strided_slice %5 {offsets = [12, 0], sizes = [2, 144], strides = [1, 1]} : vector<16x144xf32> to vector<2x144xf32>
    %cst_34 = arith.constant dense<0.000000e+00> : vector<2x144xf32>
    %190 = tpu.matmul %188, %6, %cst_34 {dimension_numbers = #tpu.dot_dimension_numbers<[1], [0], [0], [1], [0, 0, 1, 1], [], []>} : vector<2x48xf32>, vector<48x144xf32>, vector<2x144xf32> -> vector<2x144xf32>
    %191 = vector.broadcast %7 : vector<1x144xf32> to vector<2x144xf32>
    %192 = arith.addf %190, %191 : vector<2x144xf32>
    %193 = vector.extract_strided_slice %189 {offsets = [0, 0], sizes = [2, 48], strides = [1, 1]} : vector<2x144xf32> to vector<2x48xf32>
    %194 = vector.extract_strided_slice %192 {offsets = [0, 0], sizes = [2, 48], strides = [1, 1]} : vector<2x144xf32> to vector<2x48xf32>
    %195 = arith.addf %193, %194 : vector<2x48xf32>
    %196 = arith.negf %195 : vector<2x48xf32>
    %197 = math.exp %196 : vector<2x48xf32>
    %cst_35 = arith.constant 1.000000e+00 : f32
    %198 = vector.broadcast %cst_35 : f32 to vector<2x48xf32>
    %199 = arith.addf %198, %197 : vector<2x48xf32>
    %200 = arith.divf %198, %199 : vector<2x48xf32>
    %201 = vector.extract_strided_slice %189 {offsets = [0, 48], sizes = [2, 48], strides = [1, 1]} : vector<2x144xf32> to vector<2x48xf32>
    %202 = vector.extract_strided_slice %192 {offsets = [0, 48], sizes = [2, 48], strides = [1, 1]} : vector<2x144xf32> to vector<2x48xf32>
    %203 = arith.addf %201, %202 : vector<2x48xf32>
    %204 = arith.negf %203 : vector<2x48xf32>
    %205 = math.exp %204 : vector<2x48xf32>
    %cst_36 = arith.constant 1.000000e+00 : f32
    %206 = vector.broadcast %cst_36 : f32 to vector<2x48xf32>
    %207 = arith.addf %206, %205 : vector<2x48xf32>
    %208 = arith.divf %206, %207 : vector<2x48xf32>
    %209 = vector.extract_strided_slice %189 {offsets = [0, 96], sizes = [2, 48], strides = [1, 1]} : vector<2x144xf32> to vector<2x48xf32>
    %210 = vector.extract_strided_slice %192 {offsets = [0, 96], sizes = [2, 48], strides = [1, 1]} : vector<2x144xf32> to vector<2x48xf32>
    %211 = arith.mulf %200, %210 : vector<2x48xf32>
    %212 = arith.addf %209, %211 : vector<2x48xf32>
    %213 = math.tanh %212 : vector<2x48xf32>
    %cst_37 = arith.constant 1.000000e+00 : f32
    %214 = vector.broadcast %cst_37 : f32 to vector<2x48xf32>
    %215 = arith.subf %214, %208 : vector<2x48xf32>
    %216 = arith.mulf %215, %213 : vector<2x48xf32>
    %217 = arith.mulf %208, %188 : vector<2x48xf32>
    %218 = arith.addf %216, %217 : vector<2x48xf32>
    %219 = vector.extract_strided_slice %5 {offsets = [14, 0], sizes = [2, 144], strides = [1, 1]} : vector<16x144xf32> to vector<2x144xf32>
    %cst_38 = arith.constant dense<0.000000e+00> : vector<2x144xf32>
    %220 = tpu.matmul %218, %6, %cst_38 {dimension_numbers = #tpu.dot_dimension_numbers<[1], [0], [0], [1], [0, 0, 1, 1], [], []>} : vector<2x48xf32>, vector<48x144xf32>, vector<2x144xf32> -> vector<2x144xf32>
    %221 = vector.broadcast %7 : vector<1x144xf32> to vector<2x144xf32>
    %222 = arith.addf %220, %221 : vector<2x144xf32>
    %223 = vector.extract_strided_slice %219 {offsets = [0, 0], sizes = [2, 48], strides = [1, 1]} : vector<2x144xf32> to vector<2x48xf32>
    %224 = vector.extract_strided_slice %222 {offsets = [0, 0], sizes = [2, 48], strides = [1, 1]} : vector<2x144xf32> to vector<2x48xf32>
    %225 = arith.addf %223, %224 : vector<2x48xf32>
    %226 = arith.negf %225 : vector<2x48xf32>
    %227 = math.exp %226 : vector<2x48xf32>
    %cst_39 = arith.constant 1.000000e+00 : f32
    %228 = vector.broadcast %cst_39 : f32 to vector<2x48xf32>
    %229 = arith.addf %228, %227 : vector<2x48xf32>
    %230 = arith.divf %228, %229 : vector<2x48xf32>
    %231 = vector.extract_strided_slice %219 {offsets = [0, 48], sizes = [2, 48], strides = [1, 1]} : vector<2x144xf32> to vector<2x48xf32>
    %232 = vector.extract_strided_slice %222 {offsets = [0, 48], sizes = [2, 48], strides = [1, 1]} : vector<2x144xf32> to vector<2x48xf32>
    %233 = arith.addf %231, %232 : vector<2x48xf32>
    %234 = arith.negf %233 : vector<2x48xf32>
    %235 = math.exp %234 : vector<2x48xf32>
    %cst_40 = arith.constant 1.000000e+00 : f32
    %236 = vector.broadcast %cst_40 : f32 to vector<2x48xf32>
    %237 = arith.addf %236, %235 : vector<2x48xf32>
    %238 = arith.divf %236, %237 : vector<2x48xf32>
    %239 = vector.extract_strided_slice %219 {offsets = [0, 96], sizes = [2, 48], strides = [1, 1]} : vector<2x144xf32> to vector<2x48xf32>
    %240 = vector.extract_strided_slice %222 {offsets = [0, 96], sizes = [2, 48], strides = [1, 1]} : vector<2x144xf32> to vector<2x48xf32>
    %241 = arith.mulf %230, %240 : vector<2x48xf32>
    %242 = arith.addf %239, %241 : vector<2x48xf32>
    %243 = math.tanh %242 : vector<2x48xf32>
    %cst_41 = arith.constant 1.000000e+00 : f32
    %244 = vector.broadcast %cst_41 : f32 to vector<2x48xf32>
    %245 = arith.subf %244, %238 : vector<2x48xf32>
    %246 = arith.mulf %245, %243 : vector<2x48xf32>
    %247 = arith.mulf %238, %218 : vector<2x48xf32>
    %248 = arith.addf %246, %247 : vector<2x48xf32>
    %c0_42 = arith.constant 0 : index
    %c0_43 = arith.constant 0 : index
    %249 = vector.load %arg5[%c0_42, %c0_43] : memref<2x48xf32, #tpu.memory_space<vmem>>, vector<2x48xf32>
    tpu.vector_store %arg5[%c0_42, %c0_43], %248 {strides = array<i32>} : memref<2x48xf32, #tpu.memory_space<vmem>>, vector<2x48xf32>,
    return
  }
}

</mosaic_0001>

<bundles_post_ra>
// kernel: tpu_custom_call.1
= control target key start
LH: loop header
LB: loop body
LE: loop exit
PB: predicated region body
PF: predicated region fallthrough
CT: control target
= control target key end

     0   :  { %10 = vsyncpa [#allocation3], 0  ;;  %s1584_s0 = inlined_call_operand.vmem [shape: f32[16,4], index: 0, kind: input, shape index: {}]   ;;  %s1585_s1 = inlined_call_operand.vmem [shape: f32[4,144], index: 1, kind: input, shape index: {}]   ;;  %s1586_s2 = inlined_call_operand.vmem [shape: f32[1,144], index: 2, kind: input, shape index: {}]   ;;  %s1587_s3 = inlined_call_operand.hbm [shape: f32[48,144], index: 3, kind: input, shape index: {}]   ;;  %s1588_s4 = inlined_call_operand.vmem [shape: f32[1,144], index: 4, kind: input, shape index: {}]   ;;  %s1589_s5 = inlined_call_operand.hbm [shape: f32[2,48], index: 5, kind: output, shape index: {}]  }
   0x1   :  { %11 = vsyncpa [#allocation4], 0  ;;  %s1255_s18 = smov [#allocation2]  }
   0x2   :  { %s23_s19 = sshll.u32 %s1255_s18, 4  ;;  %s24_s19 = int_to_ptr.vmem [resolvable:$true] %s23_s19 }
   0x3   :  { %s1219_s20 = scalar_lea.vmem %s24_s19, 1536  ;;  %p1224_p1 = scmp.lt.s32.totalorder %s24_s19, %s24_s19 }
   0x4   :  { %p1220_p0 = scmp.ne.s32.totalorder %s24_s19, %s1219_s20  ;;  %p1225_p2 = scmp.lt.s32.totalorder %s1219_s20, %s1219_s20 }
   0x6   :  { %p1226_p3 = por %p1225_p2, %p1224_p1 }
   0x8   :  { %p1227_p4 = pnand %p1226_p3, %p1220_p0 }
   0xa   :  { %1230 = shalt.err (!%p1227_p4)
}
   0xb   :  { %s1256_s21 = smov 256   ;;  %s1257_s22 = smov 16  }
   0xc   :  { %29 = dma.hbm_to_vmem [thread:$0]  %s1587_s3, 1536, %s24_s19, [#allocation3], %s1256_s21, %s1256_s21, %s1257_s22  }
   0xd   :  { %1251 = dma.done.wait [#allocation3], 1536  }
   0xe   :  { %1252 = vsyncadd [#allocation3], 4294965760  ;;  %v1258_v0 = vmov 0.0   ;;  %v1298_v1 = vld [vmem:[#allocation2 + $0x58] sm:$0xff]  ;;  %v1300_v2 = vld [vmem:[#allocation2 + $0x50] sm:$0xff]  ;;  %vm59_vm0 = vcmask 1043456   ;;  %v40_v16 = vlaneseq }
   0xf   :  { %128 = vmatprep.mubr.f32.mxu0 %v1258_v0  ;;  %233 = vmatprep.mubr.f32.mxu1 %v1258_v0  ;;  %v1302_v3 = vld [vmem:[#allocation2 + $0x48] sm:$0xff]  ;;  %v1305_v4 = vld [vmem:[#allocation2 + $0x40] sm:$0xff]  ;;  %v1308_v5 = vld [vmem:[#allocation2 + $0x38] sm:$0xff]  ;;  %vm52_vm1 = vcmask 31744   ;;  %s1259_s29 = smov 32   ;;  %vm253_vm2 = vcmask 261120  }
  0x10   :  { %189 = vmatprep.subr.mxu1 %v1298_v1  ;;  %v1311_v6 = vld [vmem:[#allocation2 + $0x30] sm:$0xff]  ;;  %v37_v7 = vld [vmem:[%s1585_s1] sm:$0xff]  ;;  %v1317_v8 = vld [vmem:[#allocation2 + $0x28] sm:$0xff]  ;;  %v41_v17 = vshrl.u32 %v40_v16, 7  ;;  %s1261_s8 = smov 80   ;;  %vm272_vm3 = vcmask 654336  }
  0x11   :  { %190 = vmatpush1.msra.mxu1 %v1300_v2  ;;  %v51_v9 = vcombine.high %v37_v7, %v37_v7  ;;  %v1320_v10 = vld [vmem:[#allocation2 + $0x20] sm:$0xff]  ;;  %v1326_v12 = vld [vmem:[#allocation2 + $0x18] sm:$0xff]  ;;  %v1329_v13 = vld [vmem:[#allocation2 + $0x10] sm:$0xff]  ;;  %vm165_vm4 = vcmask 392192   ;;  %vm1102_vm5 = vcmask 392198  }
  0x12   :  { %191 = vmatprep.subr.mxu1 %v1302_v3  ;;  %v35_v11 = vld [vmem:[%s1584_s0] sm:$0xff]  ;;  %v1332_v14 = vld [vmem:[#allocation2 + $0x8] sm:$0xff]  ;;  %v42_v18 = vsub.s32 0, %v41_v17  ;;  %v46_v20 = vsub.s32 1, %v41_v17 }
  0x13   :  { %192 = vmatpush1.msra.mxu1 %v1305_v4  ;;  %1119 = vmatprep.subr.msk.mxu0 %vm59_vm0, %v51_v9  ;;  %v1336_v15 = vld [vmem:[#allocation2] sm:$0xff]  ;;  %v36_v46 = vld [vmem:[%s1584_s0 + $0x8] sm:$0xff]  ;;  %s1262_s0 = smov [#allocation5]  }
  0x14   :  { %193 = vmatprep.subr.mxu1 %v1308_v5  ;;  %1120 = vmatpush1.msk.msra.mxu0 %vm59_vm0, %v37_v7  ;;  %v153_v19 = vld [vmem:[%s1588_s4] sm:$0x3]  ;;  %s1110_s9 = sshll.u32 %s1262_s0, 4  ;;  %s1111_s9 = int_to_ptr.vmem [resolvable:$true] %s1110_s9 }
  0x15   :  { %194 = vmatpush1.msra.mxu1 %v1311_v6  ;;  %1121 = vmatmul.mubr.msk.f32.vlgmr.msra.gmra.mxu0 %vm52_vm1, %v35_v11  ;;  %v1373_v21 = vrot.slane %v153_v19, %v42_v18  ;;  %v1375_v23 = vrot.slane %v153_v19, %v46_v20  ;;  %v38_v27 = vld [vmem:[%s1586_s2] sm:$0x3]  ;;  %s1260_s2 = smov 96   ;;  %s1231_s10 = scalar_lea.vmem %s1111_s9, 32 }
  0x16   :  { %195 = vmatprep.subr.mxu1 %v1317_v8  ;;  %303 = vmatprep.subr.mxu0 %v1298_v1  ;;  %v1384_v28 = vrot.slane %v38_v27, %v42_v18  ;;  %v1392_v40 = vrot.slane %v38_v27, %v46_v20  ;;  %p1232_p5 = scmp.ne.s32.totalorder %s1111_s9, %s1231_s10  ;;  %p1236_p6 = scmp.lt.s32.totalorder %s1111_s9, %s1111_s9 }
  0x17   :  { %196 = vmatpush1.msra.mxu1 %v1320_v10  ;;  %304 = vmatpush1.msra.mxu0 %v1300_v2  ;;  %p1237_p7 = scmp.lt.s32.totalorder %s1231_s10, %s1231_s10 }
  0x18   :  { %197 = vmatprep.subr.mxu1 %v1326_v12  ;;  %305 = vmatprep.subr.mxu0 %v1302_v3 }
  0x19   :  { %198 = vmatpush1.msra.mxu1 %v1329_v13  ;;  %306 = vmatpush1.msra.mxu0 %v1305_v4  ;;  %p1238_p8 = por %p1237_p7, %p1236_p6 }
  0x1a   :  { %199 = vmatprep.subr.mxu1 %v1332_v14  ;;  %307 = vmatprep.subr.mxu0 %v1308_v5 }
  0x1b   :  { %200 = vmatpush1.msra.mxu1 %v1336_v15  ;;  %134 = vmatprep.mubr.f32.mxu0 %v1258_v0  ;;  %p1239_p9 = pnand %p1238_p8, %p1232_p5 }
  0x1c   :  { %234 = vmatmul.mubr.f32.vlgmr.msra.gmra.mxu1 %v1258_v0  ;;  %308 = vmatpush1.msra.mxu0 %v1311_v6 }
  0x1d   :  { %309 = vmatprep.subr.mxu0 %v1317_v8  ;;  %421 = vmatprep.subr.mxu1 %v1298_v1 }
  0x1e   :  { %310 = vmatpush1.msra.mxu0 %v1320_v10  ;;  %422 = vmatpush1.msra.mxu1 %v1300_v2 }
  0x1f   :  { %311 = vmatprep.subr.mxu0 %v1326_v12  ;;  %423 = vmatprep.subr.mxu1 %v1302_v3 }
  0x20   :  { %312 = vmatpush1.msra.mxu0 %v1329_v13  ;;  %424 = vmatpush1.msra.mxu1 %v1305_v4 }
  0x21   :  { %313 = vmatprep.subr.mxu0 %v1332_v14  ;;  %425 = vmatprep.subr.mxu1 %v1308_v5 }
  0x22   :  { %314 = vmatpush1.msra.mxu0 %v1336_v15  ;;  %426 = vmatpush1.msra.mxu1 %v1311_v6 }
  0x23   :  { %427 = vmatprep.subr.mxu1 %v1317_v8  ;;  %465 = vmatprep.mubr.f32.mxu1 %v1258_v0 }
  0x24   :  { %428 = vmatpush1.msra.mxu1 %v1320_v10  ;;  %539 = vmatprep.subr.mxu0 %v1298_v1 }
  0x25   :  { %429 = vmatprep.subr.mxu1 %v1326_v12  ;;  %1122 = vmatmul.mubr.msk.f32.gmra.mxu0 %vm52_vm1, %v36_v46 }
  0x26   :  { %430 = vmatpush1.msra.mxu1 %v1329_v13  ;;  %347 = vmatprep.mubr.f32.mxu0 %v1258_v0 }
  0x27   :  { %431 = vmatprep.subr.mxu1 %v1332_v14 }
  0x28   :  { %432 = vmatpush1.msra.mxu1 %v1336_v15 }
  0x29   :  { %657 = vmatprep.subr.mxu1 %v1298_v1 }
  0xd5   :  { %v130_v29 = vpop.f32.mrf.mxu0 }
  0xd6   :  { %v1387_v30 = vadd.f32 %v130_v29, %v1384_v28 }
  0xd7   :  { %v132_v41 = vpop.f32.mrf.mxu0 }
  0xd8   :  { %v1395_v42 = vadd.f32 %v132_v41, %v1392_v40 }
  0xdc   :  { %v235_v22 = vpop.f32.mrf.mxu1 }
  0xdd   :  { %v236_v24 = vadd.f32 %v235_v22, %v1373_v21 }
  0xde   :  { %v237_v25 = vpop.f32.mrf.mxu1 }
  0xdf   :  { %249 = vrot.lane.b32.xlu0 %v236_v24, %s1259_s29  ;;  %v238_v26 = vadd.f32 %v237_v25, %v1375_v23  ;;  %v240_v31 = vadd.f32 %v236_v24, %v1387_v30 }
  0xe1   :  { %v1123_v32 = vmul.f32 -1.442695, %v240_v31 }
  0xe3   :  { %251 = vrot.lane.b32.xlu0 %v238_v26, %s1259_s29  ;;  %1147 = vpow2.f32 %v1123_v32 }
  0xe5   :  { %v1422_v57 = vpop.f32.mrf.mxu0 }
  0xe7   :  { %v1424_v58 = vpop.f32.mrf.mxu0 }
  0xf0   :  { %v1148_v33 = vpop.eup %1147 }
  0xf1   :  { %v244_v34 = vadd.f32 1.0, %v1148_v33 }
  0xf3   :  { %1149 = vrcp.f32 %v244_v34 }
 0x100   :  { %v1150_v37 = vpop.eup %1149 }
 0x101   :  { %v265_v51 = vsub.f32 1.0, %v1150_v37  ;;  %v276_v54 = vmul.f32 0.0, %v1150_v37 }
 0x151   :  { %v250_v35 = vpop.permute.xlu0 %249 }
 0x155   :  { %v252_v36 = vpop.permute.xlu0 %251 }
 0x156   :  { %v254_v38 = vsel %vm253_vm2, %v250_v35, %v252_v36 }
 0x157   :  { %v256_v39 = vmul.f32 %v1150_v37, %v254_v38 }
 0x159   :  { %258 = vrot.lane.b32.xlu1 %v256_v39, %s1260_s2 }
 0x1cb   :  { %v259_v43 = vpop.permute.xlu1 %258 }
 0x1cc   :  { %v261_v44 = vadd.f32 %v259_v43, %v1387_v30  ;;  %v262_v45 = vadd.f32 %v259_v43, %v1395_v42 }
 0x1ce   :  { %1151 = vtanh.f32 %v261_v44 }
 0x1cf   :  { %1153 = vtanh.f32 %v262_v45 }
 0x1db   :  { %v1152_v47 = vpop.eup %1151 }
 0x1dc   :  { %v1154_v48 = vpop.eup %1153  ;;  %268 = vrot.lane.b32.xlu1 %v1152_v47, %s1261_s8 }
 0x1dd   :  { %270 = vrot.lane.b32.xlu0 %v1154_v48, %s1261_s8 }
 0x24e   :  { %v269_v49 = vpop.permute.xlu1 %268 }
 0x24f   :  { %v271_v50 = vpop.permute.xlu0 %270 }
 0x250   :  { %v273_v52 = vsel %vm272_vm3, %v269_v49, %v271_v50 }
 0x251   :  { %v275_v53 = vmul.f32 %v273_v52, %v265_v51 }
 0x253   :  { %v277_v55 = vadd.f32 %v276_v54, %v275_v53 }
 0x255   :  { %279 = vrot.lane.b32.xlu1 %v277_v55, %s1261_s8  ;;  %v391_v33 = vrot.slane %v277_v55, 6 }
 0x2c7   :  { %v280_v56 = vpop.permute.xlu1 %279 }
 0x2c8   :  { %1124 = vmatmul.mubr.msk.f32.vlgmr.msra.gmra.mxu0 %vm165_vm4, %v280_v56 }
 0x2c9   :  { %540 = vmatpush1.msra.mxu0 %v1300_v2  ;;  %583 = vmatprep.mubr.f32.mxu0 %v1258_v0 }
 0x2ca   :  { %541 = vmatprep.subr.mxu0 %v1302_v3 }
 0x2cb   :  { %542 = vmatpush1.msra.mxu0 %v1305_v4 }
 0x2cc   :  { %543 = vmatprep.subr.mxu0 %v1308_v5 }
 0x2cd   :  { %544 = vmatpush1.msra.mxu0 %v1311_v6 }
 0x2ce   :  { %545 = vmatprep.subr.mxu0 %v1317_v8 }
 0x2cf   :  { %546 = vmatpush1.msra.mxu0 %v1320_v10 }
 0x2d0   :  { %547 = vmatprep.subr.mxu0 %v1326_v12 }
 0x2d1   :  { %548 = vmatpush1.msra.mxu0 %v1329_v13 }
 0x2d2   :  { %549 = vmatprep.subr.mxu0 %v1332_v14 }
 0x2d3   :  { %550 = vmatpush1.msra.mxu0 %v1336_v15 }
 0x2d4   :  { %770 = vmatprep.subr.mxu0 %v1298_v1 }
 0x388   :  { %v349_v59 = vpop.f32.mrf.mxu0 }
 0x389   :  { %v350_v60 = vadd.f32 %v349_v59, %v1373_v21 }
 0x38a   :  { %v351_v61 = vpop.f32.mrf.mxu0 }
 0x38b   :  { %v355_v62 = vrot.slane %v350_v60, 6  ;;  %v352_v63 = vadd.f32 %v351_v61, %v1375_v23 }
 0x38d   :  { %v365_v7 = vrot.slane %v352_v63, 6  ;;  %366 = vrot.lane.b32.xlu0 %v355_v62, %s1259_s29  ;;  %v357_v9 = vadd.f32 %v355_v62, %v1387_v30 }
 0x38f   :  { %368 = vrot.lane.b32.xlu1 %v365_v7, %s1259_s29  ;;  %v1125_v11 = vmul.f32 -1.442695, %v357_v9 }
 0x391   :  { %1155 = vpow2.f32 %v1125_v11 }
 0x39e   :  { %v1156_v16 = vpop.eup %1155 }
 0x39f   :  { %v361_v17 = vadd.f32 1.0, %v1156_v16 }
 0x3a1   :  { %1157 = vrcp.f32 %v361_v17 }
 0x3ae   :  { %v1158_v20 = vpop.eup %1157 }
 0x3af   :  { %v381_v35 = vsub.f32 1.0, %v1158_v20  ;;  %v393_v38 = vmul.f32 %v1158_v20, %v391_v33 }
 0x3ff   :  { %v367_v18 = vpop.permute.xlu0 %366 }
 0x401   :  { %v369_v19 = vpop.permute.xlu1 %368 }
 0x402   :  { %v370_v22 = vsel %vm253_vm2, %v367_v18, %v369_v19 }
 0x403   :  { %v372_v24 = vmul.f32 %v1158_v20, %v370_v22 }
 0x405   :  { %374 = vrot.lane.b32.xlu0 %v372_v24, %s1260_s2 }
 0x477   :  { %v375_v25 = vpop.permute.xlu0 %374 }
 0x478   :  { %v377_v26 = vadd.f32 %v375_v25, %v1387_v30  ;;  %v378_v27 = vadd.f32 %v375_v25, %v1395_v42 }
 0x47a   :  { %1159 = vtanh.f32 %v377_v26 }
 0x47b   :  { %1161 = vtanh.f32 %v378_v27 }
 0x487   :  { %v1160_v29 = vpop.eup %1159 }
 0x488   :  { %v1162_v31 = vpop.eup %1161  ;;  %384 = vrot.lane.b32.xlu1 %v1160_v29, %s1261_s8 }
 0x489   :  { %386 = vrot.lane.b32.xlu0 %v1162_v31, %s1261_s8 }
 0x4fa   :  { %v385_v32 = vpop.permute.xlu1 %384 }
 0x4fb   :  { %v387_v34 = vpop.permute.xlu0 %386 }
 0x4fc   :  { %v388_v36 = vsel %vm272_vm3, %v385_v32, %v387_v34 }
 0x4fd   :  { %v390_v37 = vmul.f32 %v388_v36, %v381_v35 }
 0x4ff   :  { %v394_v39 = vadd.f32 %v393_v38, %v390_v37 }
 0x501   :  { %v396_v41 = vrot.slane %v394_v39, 2  ;;  %v509_v16 = vrot.slane %v394_v39, 6 }
 0x503   :  { %397 = vrot.lane.b32.xlu1 %v396_v41, %s1261_s8 }
 0x575   :  { %v398_v43 = vpop.permute.xlu1 %397 }
 0x576   :  { %1126 = vmatmul.mubr.msk.f32.vlgmr.msra.gmra.mxu1 %vm165_vm4, %v398_v43 }
 0x577   :  { %658 = vmatpush1.msra.mxu1 %v1300_v2  ;;  %701 = vmatprep.mubr.f32.mxu1 %v1258_v0 }
 0x578   :  { %659 = vmatprep.subr.mxu1 %v1302_v3 }
 0x579   :  { %660 = vmatpush1.msra.mxu1 %v1305_v4 }
 0x57a   :  { %661 = vmatprep.subr.mxu1 %v1308_v5 }
 0x57b   :  { %662 = vmatpush1.msra.mxu1 %v1311_v6 }
 0x57c   :  { %663 = vmatprep.subr.mxu1 %v1317_v8 }
 0x57d   :  { %664 = vmatpush1.msra.mxu1 %v1320_v10 }
 0x57e   :  { %665 = vmatprep.subr.mxu1 %v1326_v12 }
 0x57f   :  { %666 = vmatpush1.msra.mxu1 %v1329_v13 }
 0x580   :  { %667 = vmatprep.subr.mxu1 %v1332_v14 }
 0x581   :  { %668 = vmatpush1.msra.mxu1 %v1336_v15 }
 0x582   :  { %888 = vmatprep.subr.mxu1 %v1298_v1 }
 0x636   :  { %v467_v44 = vpop.f32.mrf.mxu1 }
 0x637   :  { %v468_v45 = vadd.f32 %v467_v44, %v1373_v21 }
 0x638   :  { %v469_v46 = vpop.f32.mrf.mxu1 }
 0x639   :  { %v473_v47 = vrot.slane %v468_v45, 4  ;;  %v470_v48 = vadd.f32 %v469_v46, %v1375_v23 }
 0x63b   :  { %v483_v49 = vrot.slane %v470_v48, 4  ;;  %484 = vrot.lane.b32.xlu0 %v473_v47, %s1259_s29  ;;  %v475_v50 = vadd.f32 %v473_v47, %v1387_v30 }
 0x63d   :  { %486 = vrot.lane.b32.xlu1 %v483_v49, %s1259_s29  ;;  %v1127_v51 = vmul.f32 -1.442695, %v475_v50 }
 0x63f   :  { %1163 = vpow2.f32 %v1127_v51 }
 0x64c   :  { %v1164_v52 = vpop.eup %1163 }
 0x64d   :  { %v479_v53 = vadd.f32 1.0, %v1164_v52 }
 0x64f   :  { %1165 = vrcp.f32 %v479_v53 }
 0x65c   :  { %v1166_v56 = vpop.eup %1165 }
 0x65d   :  { %v499_v18 = vsub.f32 1.0, %v1166_v56  ;;  %v511_v20 = vmul.f32 %v1166_v56, %v509_v16 }
 0x6ad   :  { %v485_v54 = vpop.permute.xlu0 %484 }
 0x6af   :  { %v487_v55 = vpop.permute.xlu1 %486 }
 0x6b0   :  { %v488_v59 = vsel %vm253_vm2, %v485_v54, %v487_v55 }
 0x6b1   :  { %v490_v60 = vmul.f32 %v1166_v56, %v488_v59 }
 0x6b3   :  { %492 = vrot.lane.b32.xlu0 %v490_v60, %s1260_s2 }
 0x725   :  { %v493_v61 = vpop.permute.xlu0 %492 }
 0x726   :  { %v495_v62 = vadd.f32 %v493_v61, %v1387_v30  ;;  %v496_v63 = vadd.f32 %v493_v61, %v1395_v42 }
 0x728   :  { %1167 = vtanh.f32 %v495_v62 }
 0x729   :  { %1169 = vtanh.f32 %v496_v63 }
 0x735   :  { %v1168_v7 = vpop.eup %1167 }
 0x736   :  { %v1170_v9 = vpop.eup %1169  ;;  %502 = vrot.lane.b32.xlu1 %v1168_v7, %s1261_s8  ;;  %v1512_v7 = vadd.f32 %v1422_v57, %v1384_v28 }
 0x737   :  { %504 = vrot.lane.b32.xlu0 %v1170_v9, %s1261_s8 }
 0x7a8   :  { %v503_v11 = vpop.permute.xlu1 %502 }
 0x7a9   :  { %v505_v17 = vpop.permute.xlu0 %504 }
 0x7aa   :  { %v506_v19 = vsel %vm272_vm3, %v503_v11, %v505_v17 }
 0x7ab   :  { %v508_v22 = vmul.f32 %v506_v19, %v499_v18 }
 0x7ad   :  { %v512_v24 = vadd.f32 %v511_v20, %v508_v22 }
 0x7af   :  { %v514_v25 = vrot.slane %v512_v24, 4  ;;  %v627_v51 = vrot.slane %v512_v24, 6 }
 0x7b1   :  { %515 = vrot.lane.b32.xlu1 %v514_v25, %s1261_s8  ;;  %v1519_v25 = vadd.f32 %v1424_v58, %v1392_v40 }
 0x823   :  { %v516_v26 = vpop.permute.xlu1 %515 }
 0x824   :  { %1128 = vmatmul.mubr.msk.f32.vlgmr.msra.gmra.mxu0 %vm165_vm4, %v516_v26 }
 0x825   :  { %771 = vmatpush1.msra.mxu0 %v1300_v2  ;;  %814 = vmatprep.mubr.f32.mxu0 %v1258_v0 }
 0x826   :  { %772 = vmatprep.subr.mxu0 %v1302_v3 }
 0x827   :  { %773 = vmatpush1.msra.mxu0 %v1305_v4 }
 0x828   :  { %774 = vmatprep.subr.mxu0 %v1308_v5 }
 0x829   :  { %775 = vmatpush1.msra.mxu0 %v1311_v6 }
 0x82a   :  { %776 = vmatprep.subr.mxu0 %v1317_v8 }
 0x82b   :  { %777 = vmatpush1.msra.mxu0 %v1320_v10 }
 0x82c   :  { %778 = vmatprep.subr.mxu0 %v1326_v12 }
 0x82d   :  { %779 = vmatpush1.msra.mxu0 %v1329_v13 }
 0x82e   :  { %780 = vmatprep.subr.mxu0 %v1332_v14 }
 0x82f   :  { %781 = vmatpush1.msra.mxu0 %v1336_v15 }
 0x830   :  { %1006 = vmatprep.subr.mxu0 %v1298_v1 }
 0x8e4   :  { %v585_v27 = vpop.f32.mrf.mxu0 }
 0x8e5   :  { %v586_v29 = vadd.f32 %v585_v27, %v1373_v21 }
 0x8e6   :  { %v587_v31 = vpop.f32.mrf.mxu0 }
 0x8e7   :  { %v591_v32 = vrot.slane %v586_v29, 2  ;;  %v588_v33 = vadd.f32 %v587_v31, %v1375_v23 }
 0x8e9   :  { %v601_v34 = vrot.slane %v588_v33, 2  ;;  %602 = vrot.lane.b32.xlu0 %v591_v32, %s1259_s29  ;;  %v593_v35 = vadd.f32 %v591_v32, %v1387_v30 }
 0x8eb   :  { %604 = vrot.lane.b32.xlu1 %v601_v34, %s1259_s29  ;;  %v1129_v36 = vmul.f32 -1.442695, %v593_v35 }
 0x8ed   :  { %1171 = vpow2.f32 %v1129_v36 }
 0x8fa   :  { %v1172_v37 = vpop.eup %1171 }
 0x8fb   :  { %v597_v38 = vadd.f32 1.0, %v1172_v37 }
 0x8fd   :  { %1173 = vrcp.f32 %v597_v38 }
 0x90a   :  { %v1174_v41 = vpop.eup %1173 }
 0x90b   :  { %v617_v53 = vsub.f32 1.0, %v1174_v41  ;;  %v629_v56 = vmul.f32 %v1174_v41, %v627_v51 }
 0x95b   :  { %v603_v1 = vpop.permute.xlu0 %602 }
 0x95d   :  { %v605_v39 = vpop.permute.xlu1 %604 }
 0x95e   :  { %v606_v43 = vsel %vm253_vm2, %v603_v1, %v605_v39 }
 0x95f   :  { %v608_v44 = vmul.f32 %v1174_v41, %v606_v43 }
 0x961   :  { %610 = vrot.lane.b32.xlu0 %v608_v44, %s1260_s2 }
 0x9d3   :  { %v611_v45 = vpop.permute.xlu0 %610 }
 0x9d4   :  { %v613_v46 = vadd.f32 %v611_v45, %v1387_v30  ;;  %v614_v47 = vadd.f32 %v611_v45, %v1395_v42 }
 0x9d6   :  { %1175 = vtanh.f32 %v613_v46 }
 0x9d7   :  { %1177 = vtanh.f32 %v614_v47 }
 0x9e3   :  { %v1176_v48 = vpop.eup %1175 }
 0x9e4   :  { %v1178_v49 = vpop.eup %1177  ;;  %620 = vrot.lane.b32.xlu1 %v1176_v48, %s1261_s8 }
 0x9e5   :  { %622 = vrot.lane.b32.xlu0 %v1178_v49, %s1261_s8 }
 0xa56   :  { %v621_v50 = vpop.permute.xlu1 %620 }
 0xa57   :  { %v623_v52 = vpop.permute.xlu0 %622 }
 0xa58   :  { %v624_v54 = vsel %vm272_vm3, %v621_v50, %v623_v52 }
 0xa59   :  { %v626_v55 = vmul.f32 %v624_v54, %v617_v53 }
 0xa5b   :  { %v630_v59 = vadd.f32 %v629_v56, %v626_v55 }
 0xa5d   :  { %v632_v30 = vrot.slane %v630_v59, 6 }
 0xa5f   :  { %633 = vrot.lane.b32.xlu1 %v632_v30, %s1261_s8 }
 0xad1   :  { %v634_v42 = vpop.permute.xlu1 %633 }
 0xad2   :  { %1130 = vmatmul.mubr.msk.f32.vlgmr.msra.gmra.mxu1 %vm165_vm4, %v634_v42 }
 0xad3   :  { %889 = vmatpush1.msra.mxu1 %v1300_v2  ;;  %932 = vmatprep.mubr.f32.mxu1 %v1258_v0 }
 0xad4   :  { %890 = vmatprep.subr.mxu1 %v1302_v3 }
 0xad5   :  { %891 = vmatpush1.msra.mxu1 %v1305_v4 }
 0xad6   :  { %892 = vmatprep.subr.mxu1 %v1308_v5 }
 0xad7   :  { %893 = vmatpush1.msra.mxu1 %v1311_v6 }
 0xad8   :  { %894 = vmatprep.subr.mxu1 %v1317_v8 }
 0xad9   :  { %895 = vmatpush1.msra.mxu1 %v1320_v10 }
 0xada   :  { %896 = vmatprep.subr.mxu1 %v1326_v12 }
 0xadb   :  { %897 = vmatpush1.msra.mxu1 %v1329_v13 }
 0xadc   :  { %898 = vmatprep.subr.mxu1 %v1332_v14 }
 0xadd   :  { %899 = vmatpush1.msra.mxu1 %v1336_v15 }
 0xb92   :  { %v703_v60 = vpop.f32.mrf.mxu1 }
 0xb93   :  { %v704_v61 = vadd.f32 %v703_v60, %v1373_v21 }
 0xb94   :  { %v705_v62 = vpop.f32.mrf.mxu1 }
 0xb95   :  { %v706_v63 = vadd.f32 %v705_v62, %v1375_v23  ;;  %717 = vrot.lane.b32.xlu0 %v704_v61, %s1259_s29  ;;  %v708_v9 = vadd.f32 %v704_v61, %v1512_v7 }
 0xb97   :  { %719 = vrot.lane.b32.xlu1 %v706_v63, %s1259_s29  ;;  %v1131_v11 = vmul.f32 -1.442695, %v708_v9 }
 0xb99   :  { %1179 = vpow2.f32 %v1131_v11 }
 0xba6   :  { %v1180_v16 = vpop.eup %1179 }
 0xba7   :  { %v712_v17 = vadd.f32 1.0, %v1180_v16 }
 0xba9   :  { %1181 = vrcp.f32 %v712_v17 }
 0xbb6   :  { %v1182_v20 = vpop.eup %1181 }
 0xbb7   :  { %v732_v33 = vsub.f32 1.0, %v1182_v20  ;;  %v743_v58 = vmul.f32 %v1182_v20, %v632_v30 }
 0xc07   :  { %v718_v18 = vpop.permute.xlu0 %717 }
 0xc09   :  { %v720_v19 = vpop.permute.xlu1 %719 }
 0xc0a   :  { %v721_v22 = vsel %vm253_vm2, %v718_v18, %v720_v19 }
 0xc0b   :  { %v723_v24 = vmul.f32 %v1182_v20, %v721_v22 }
 0xc0d   :  { %725 = vrot.lane.b32.xlu0 %v723_v24, %s1260_s2 }
 0xc7f   :  { %v726_v28 = vpop.permute.xlu0 %725 }
 0xc80   :  { %v728_v57 = vadd.f32 %v726_v28, %v1512_v7  ;;  %v729_v26 = vadd.f32 %v726_v28, %v1519_v25 }
 0xc82   :  { %1183 = vtanh.f32 %v728_v57 }
 0xc83   :  { %1185 = vtanh.f32 %v729_v26 }
 0xc8f   :  { %v1184_v27 = vpop.eup %1183 }
 0xc90   :  { %v1186_v29 = vpop.eup %1185  ;;  %735 = vrot.lane.b32.xlu1 %v1184_v27, %s1261_s8 }
 0xc91   :  { %737 = vrot.lane.b32.xlu0 %v1186_v29, %s1261_s8 }
 0xd02   :  { %v736_v31 = vpop.permute.xlu1 %735 }
 0xd03   :  { %v738_v32 = vpop.permute.xlu0 %737 }
 0xd04   :  { %v739_v34 = vsel %vm272_vm3, %v736_v31, %v738_v32 }
 0xd05   :  { %v741_v40 = vmul.f32 %v739_v34, %v732_v33 }
 0xd07   :  { %v744_v35 = vadd.f32 %v743_v58, %v741_v40 }
 0xd09   :  { %746 = vrot.lane.b32.xlu1 %v744_v35, %s1261_s8  ;;  %v858_v47 = vrot.slane %v744_v35, 6 }
 0xd7b   :  { %v747_v36 = vpop.permute.xlu1 %746 }
 0xd7c   :  { %1132 = vmatmul.mubr.msk.f32.vlgmr.msra.gmra.mxu0 %vm165_vm4, %v747_v36 }
 0xd7d   :  { %1007 = vmatpush1.msra.mxu0 %v1300_v2  ;;  %1050 = vmatprep.mubr.f32.mxu0 %v1258_v0 }
 0xd7e   :  { %1008 = vmatprep.subr.mxu0 %v1302_v3 }
 0xd7f   :  { %1009 = vmatpush1.msra.mxu0 %v1305_v4 }
 0xd80   :  { %1010 = vmatprep.subr.mxu0 %v1308_v5 }
 0xd81   :  { %1011 = vmatpush1.msra.mxu0 %v1311_v6 }
 0xd82   :  { %1012 = vmatprep.subr.mxu0 %v1317_v8 }
 0xd83   :  { %1013 = vmatpush1.msra.mxu0 %v1320_v10 }
 0xd84   :  { %1014 = vmatprep.subr.mxu0 %v1326_v12 }
 0xd85   :  { %1015 = vmatpush1.msra.mxu0 %v1329_v13 }
 0xd86   :  { %1016 = vmatprep.subr.mxu0 %v1332_v14 }
 0xd87   :  { %1017 = vmatpush1.msra.mxu0 %v1336_v15 }
 0xe3c   :  { %v816_v0 = vpop.f32.mrf.mxu0 }
 0xe3d   :  { %v817_v2 = vadd.f32 %v816_v0, %v1373_v21 }
 0xe3e   :  { %v818_v3 = vpop.f32.mrf.mxu0 }
 0xe3f   :  { %v822_v4 = vrot.slane %v817_v2, 6  ;;  %v819_v5 = vadd.f32 %v818_v3, %v1375_v23 }
 0xe41   :  { %v832_v6 = vrot.slane %v819_v5, 6  ;;  %833 = vrot.lane.b32.xlu0 %v822_v4, %s1259_s29  ;;  %v824_v8 = vadd.f32 %v822_v4, %v1512_v7 }
 0xe43   :  { %835 = vrot.lane.b32.xlu1 %v832_v6, %s1259_s29  ;;  %v1133_v10 = vmul.f32 -1.442695, %v824_v8 }
 0xe45   :  { %1187 = vpow2.f32 %v1133_v10 }
 0xe52   :  { %v1188_v12 = vpop.eup %1187 }
 0xe53   :  { %v828_v13 = vadd.f32 1.0, %v1188_v12 }
 0xe55   :  { %1189 = vrcp.f32 %v828_v13 }
 0xe62   :  { %v1190_v37 = vpop.eup %1189 }
 0xe63   :  { %v848_v49 = vsub.f32 1.0, %v1190_v37  ;;  %v860_v52 = vmul.f32 %v1190_v37, %v858_v47 }
 0xeb3   :  { %v834_v14 = vpop.permute.xlu0 %833 }
 0xeb5   :  { %v836_v15 = vpop.permute.xlu1 %835 }
 0xeb6   :  { %v837_v38 = vsel %vm253_vm2, %v834_v14, %v836_v15 }
 0xeb7   :  { %v839_v1 = vmul.f32 %v1190_v37, %v837_v38 }
 0xeb9   :  { %841 = vrot.lane.b32.xlu0 %v839_v1, %s1260_s2 }
 0xf2b   :  { %v842_v39 = vpop.permute.xlu0 %841 }
 0xf2c   :  { %v844_v41 = vadd.f32 %v842_v39, %v1512_v7  ;;  %v845_v43 = vadd.f32 %v842_v39, %v1519_v25 }
 0xf2e   :  { %1191 = vtanh.f32 %v844_v41 }
 0xf2f   :  { %1193 = vtanh.f32 %v845_v43 }
 0xf3b   :  { %v1192_v44 = vpop.eup %1191 }
 0xf3c   :  { %v1194_v45 = vpop.eup %1193  ;;  %851 = vrot.lane.b32.xlu1 %v1192_v44, %s1261_s8 }
 0xf3d   :  { %853 = vrot.lane.b32.xlu0 %v1194_v45, %s1261_s8 }
 0xfae   :  { %v852_v46 = vpop.permute.xlu1 %851 }
 0xfaf   :  { %v854_v48 = vpop.permute.xlu0 %853 }
 0xfb0   :  { %v855_v50 = vsel %vm272_vm3, %v852_v46, %v854_v48 }
 0xfb1   :  { %v857_v51 = vmul.f32 %v855_v50, %v848_v49 }
 0xfb3   :  { %v861_v53 = vadd.f32 %v860_v52, %v857_v51 }
 0xfb5   :  { %v863_v54 = vrot.slane %v861_v53, 2  ;;  %v976_v29 = vrot.slane %v861_v53, 6 }
 0xfb7   :  { %864 = vrot.lane.b32.xlu1 %v863_v54, %s1261_s8 }
0x1029   :  { %v865_v55 = vpop.permute.xlu1 %864 }
0x102a   :  { %1134 = vmatmul.mubr.msk.f32.vlgmr.msra.gmra.mxu1 %vm165_vm4, %v865_v55 }
0x10ea   :  { %v934_v56 = vpop.f32.mrf.mxu1 }
0x10eb   :  { %v935_v59 = vadd.f32 %v934_v56, %v1373_v21 }
0x10ec   :  { %v936_v30 = vpop.f32.mrf.mxu1 }
0x10ed   :  { %v940_v42 = vrot.slane %v935_v59, 4  ;;  %v937_v60 = vadd.f32 %v936_v30, %v1375_v23 }
0x10ef   :  { %v950_v61 = vrot.slane %v937_v60, 4  ;;  %951 = vrot.lane.b32.xlu0 %v940_v42, %s1259_s29  ;;  %v942_v62 = vadd.f32 %v940_v42, %v1512_v7 }
0x10f1   :  { %953 = vrot.lane.b32.xlu1 %v950_v61, %s1259_s29  ;;  %v1135_v63 = vmul.f32 -1.442695, %v942_v62 }
0x10f3   :  { %1195 = vpow2.f32 %v1135_v63 }
0x1100   :  { %v1196_v9 = vpop.eup %1195 }
0x1101   :  { %v946_v11 = vadd.f32 1.0, %v1196_v9 }
0x1103   :  { %1197 = vrcp.f32 %v946_v11 }
0x1110   :  { %v1198_v18 = vpop.eup %1197 }
0x1111   :  { %v966_v32 = vsub.f32 1.0, %v1198_v18  ;;  %v978_v34 = vmul.f32 %v1198_v18, %v976_v29 }
0x1161   :  { %v952_v16 = vpop.permute.xlu0 %951 }
0x1163   :  { %v954_v17 = vpop.permute.xlu1 %953 }
0x1164   :  { %v955_v19 = vsel %vm253_vm2, %v952_v16, %v954_v17 }
0x1165   :  { %v957_v20 = vmul.f32 %v1198_v18, %v955_v19 }
0x1167   :  { %959 = vrot.lane.b32.xlu0 %v957_v20, %s1260_s2 }
0x11d9   :  { %v960_v22 = vpop.permute.xlu0 %959 }
0x11da   :  { %v962_v24 = vadd.f32 %v960_v22, %v1512_v7  ;;  %v963_v28 = vadd.f32 %v960_v22, %v1519_v25 }
0x11dc   :  { %1199 = vtanh.f32 %v962_v24 }
0x11dd   :  { %1201 = vtanh.f32 %v963_v28 }
0x11e9   :  { %v1200_v57 = vpop.eup %1199 }
0x11ea   :  { %v1202_v26 = vpop.eup %1201  ;;  %969 = vrot.lane.b32.xlu1 %v1200_v57, %s1261_s8 }
0x11eb   :  { %971 = vrot.lane.b32.xlu0 %v1202_v26, %s1261_s8 }
0x125c   :  { %v970_v27 = vpop.permute.xlu1 %969 }
0x125d   :  { %v972_v31 = vpop.permute.xlu0 %971 }
0x125e   :  { %v973_v33 = vsel %vm272_vm3, %v970_v27, %v972_v31 }
0x125f   :  { %v975_v40 = vmul.f32 %v973_v33, %v966_v32 }
0x1261   :  { %v979_v58 = vadd.f32 %v978_v34, %v975_v40 }
0x1263   :  { %v981_v35 = vrot.slane %v979_v58, 4  ;;  %v1094_v45 = vrot.slane %v979_v58, 6 }
0x1265   :  { %982 = vrot.lane.b32.xlu1 %v981_v35, %s1261_s8 }
0x12d7   :  { %v983_v36 = vpop.permute.xlu1 %982 }
0x12d8   :  { %1136 = vmatmul.mubr.msk.f32.vlgmr.msra.gmra.mxu0 %vm165_vm4, %v983_v36 }
0x1398   :  { %v1052_v0 = vpop.f32.mrf.mxu0 }
0x1399   :  { %v1053_v2 = vadd.f32 %v1052_v0, %v1373_v21 }
0x139a   :  { %v1054_v3 = vpop.f32.mrf.mxu0 }
0x139b   :  { %v1058_v4 = vrot.slane %v1053_v2, 2  ;;  %v1055_v5 = vadd.f32 %v1054_v3, %v1375_v23 }
0x139d   :  { %v1068_v6 = vrot.slane %v1055_v5, 2  ;;  %1069 = vrot.lane.b32.xlu0 %v1058_v4, %s1259_s29  ;;  %v1060_v8 = vadd.f32 %v1058_v4, %v1512_v7 }
0x139f   :  { %1071 = vrot.lane.b32.xlu1 %v1068_v6, %s1259_s29  ;;  %v1137_v10 = vmul.f32 -1.442695, %v1060_v8 }
0x13a1   :  { %1203 = vpow2.f32 %v1137_v10 }
0x13ae   :  { %v1204_v12 = vpop.eup %1203 }
0x13af   :  { %v1064_v13 = vadd.f32 1.0, %v1204_v12 }
0x13b1   :  { %1205 = vrcp.f32 %v1064_v13 }
0x13be   :  { %v1206_v37 = vpop.eup %1205 }
0x13bf   :  { %v1084_v47 = vsub.f32 1.0, %v1206_v37  ;;  %v1096_v50 = vmul.f32 %v1206_v37, %v1094_v45 }
0x140f   :  { %v1070_v14 = vpop.permute.xlu0 %1069 }
0x1411   :  { %v1072_v15 = vpop.permute.xlu1 %1071 }
0x1412   :  { %v1073_v21 = vsel %vm253_vm2, %v1070_v14, %v1072_v15 }
0x1413   :  { %v1075_v38 = vmul.f32 %v1206_v37, %v1073_v21 }
0x1415   :  { %1077 = vrot.lane.b32.xlu0 %v1075_v38, %s1260_s2 }
0x1487   :  { %v1078_v23 = vpop.permute.xlu0 %1077 }
0x1488   :  { %v1080_v1 = vadd.f32 %v1078_v23, %v1512_v7  ;;  %v1081_v39 = vadd.f32 %v1078_v23, %v1519_v25 }
0x148a   :  { %1207 = vtanh.f32 %v1080_v1 }
0x148b   :  { %1209 = vtanh.f32 %v1081_v39 }
0x1497   :  { %v1208_v41 = vpop.eup %1207 }
0x1498   :  { %v1210_v43 = vpop.eup %1209  ;;  %1087 = vrot.lane.b32.xlu1 %v1208_v41, %s1261_s8 }
0x1499   :  { %1089 = vrot.lane.b32.xlu0 %v1210_v43, %s1261_s8 }
0x150a   :  { %v1088_v44 = vpop.permute.xlu1 %1087 }
0x150b   :  { %v1090_v46 = vpop.permute.xlu0 %1089 }
0x150c   :  { %v1091_v48 = vsel %vm272_vm3, %v1088_v44, %v1090_v46 }
0x150d   :  { %v1093_v49 = vmul.f32 %v1091_v48, %v1084_v47 }
0x150f   :  { %v1097_v51 = vadd.f32 %v1096_v50, %v1093_v49 }
0x1511   :  { %1099 = vrot.lane.b32.xlu1 %v1097_v51, %s1261_s8 }
0x1583   :  { %v1100_v7 = vpop.permute.xlu1 %1099 }
0x1584   :  { %1103 = vst.msk [vmem:[#allocation5 - $0x6] sm:$0xc0] %vm1102_vm5, %v1100_v7 }
0x1585   :  { %1242 = shalt.err (!%p1239_p9)
}
0x1586   :  { %1113 = dma.vmem_to_hbm [thread:$0]  %s1111_s9, 32, %s1589_s5, [#allocation4]  }
0x1587   :  { %1253 = dma.done.wait [#allocation4], 32  }
0x1588   :  { %1254 = vsyncadd [#allocation4], 4294967264 }
0x1589   :  { %1117 = vsyncpa [#allocation3], 1 }
0x158a   :  { %1118 = vsyncpa [#allocation4], 1 }

</bundles_post_ra>
